<compile_context>
chip_gen: v6e
topology: v6e:2x2x1
jax: 0.10.0
libtpu: 0.0.40
codegen_flags: <defaults>
</compile_context>

<pallas_src>
import functools

import jax
import jax.numpy as jnp
from jax.experimental import pallas as pl
from jax.experimental.pallas import tpu as pltpu

_SUBLANE = 8
_LANE = 128
_INPUT_PIPELINE_BUDGET = 12 * 1024 * 1024   # 2 inputs x 2 pipeline buffers
_MIN_BLOCK_BYTES = 1 * 1024 * 1024          # keep input blocks >= ~1 MiB (roofline knee)
_TARGET_BATCH_TILES = 4                     # keep the parallel axis busy (2 TCs on v7x)
_MAX_TILE_B = 2048
_VMEM_LIMIT_BYTES = 32 * 1024 * 1024        # <= v7x scoped default; fine on v5e/v6e
_UNROLL_CHUNKS = 8                          # statically unroll short chunk loops


def _round_up(v, m):
    return ((v + m - 1) // m) * m


def _cdiv(a, b):
    return (a + b - 1) // b


def _neg_pearson_kernel(x_ref, y_ref, cos_ref, xy_acc, xx_acc, yy_acc, *,
                        tile_t, grid_t, total_t):
    j = pl.program_id(1)                      # reduction (T) axis, last grid dim
    tile_b = x_ref.shape[0]
    rem = total_t - (grid_t - 1) * tile_t     # valid columns in the last T tile
    ragged = (total_t % tile_t) != 0

    @pl.when(j == 0)
    def _():
        xy_acc[...] = jnp.zeros_like(xy_acc)
        xx_acc[...] = jnp.zeros_like(xx_acc)
        yy_acc[...] = jnp.zeros_like(yy_acc)

    def accumulate(masked):
        if masked:
            n_chunks = _cdiv(rem, _LANE)      # skip fully-out-of-bounds chunks
            col_ids = jax.lax.broadcasted_iota(jnp.int32, (tile_b, _LANE), 1)
        else:
            n_chunks = tile_t // _LANE

        def chunk_step(c):
            off = c * _LANE
            if not isinstance(c, int):
                off = pl.multiple_of(off, _LANE)
            # Per-chunk upcast keeps temporaries in vregs (no block-sized f32
            # copies of x / y in VMEM); for f32 inputs the cast is a no-op.
            xc = x_ref[:, pl.ds(off, _LANE)].astype(jnp.float32)
            yc = y_ref[:, pl.ds(off, _LANE)].astype(jnp.float32)
            if masked:
                valid = col_ids < (rem - c * _LANE)
                xc = jnp.where(valid, xc, 0.0)   # select (not mul) -> kills NaN garbage
                yc = jnp.where(valid, yc, 0.0)
            # Lane-dense per-column partial sums; pure VPU adds, no XLU per step.
            xy_acc[...] += xc * yc
            xx_acc[...] += xc * xc
            yy_acc[...] += yc * yc

        if n_chunks <= _UNROLL_CHUNKS:
            for c in range(n_chunks):         # static unroll, static slices
                chunk_step(c)
        else:
            @pl.loop(0, n_chunks)
            def _(c):
                chunk_step(c)

    # Static dispatch: only the last T tile pays for the column mask.
    if not ragged:
        accumulate(False)
    elif grid_t == 1:
        accumulate(True)
    else:
        @pl.when(j < grid_t - 1)
        def _():
            accumulate(False)

        @pl.when(j == grid_t - 1)
        def _():
            accumulate(True)

    @pl.when(j == grid_t - 1)
    def _():
        # Single cross-lane reduce per batch tile (XLU), then EUP rsqrt.
        xy = jnp.sum(xy_acc[...], axis=1, keepdims=True)
        xx = jnp.sum(xx_acc[...], axis=1, keepdims=True)
        yy = jnp.sum(yy_acc[...], axis=1, keepdims=True)
        eps2 = jnp.float32(1e-16)   # max(sqrt(s), 1e-8) == sqrt(max(s, 1e-16))
        cos_ref[...] = (xy
                        * jax.lax.rsqrt(jnp.maximum(xx, eps2))
                        * jax.lax.rsqrt(jnp.maximum(yy, eps2)))


def _choose_tiles(B, T, itemsize):
    """Pick (tile_b, tile_t): big blocks within the VMEM budget, >=~4 batch tiles."""
    sublane = max(_SUBLANE, 32 // itemsize)     # packed sublane tile: 8 f32/16 bf16/32 i8
    t_pad = _round_up(T, _LANE)
    per_row = 2 * 2 * itemsize                  # 2 inputs x 2 pipeline buffers
    if per_row * sublane * t_pad <= _INPUT_PIPELINE_BUDGET:
        tile_t = t_pad                          # whole signal per block
    else:
        tile_t = max(_LANE,
                     (_INPUT_PIPELINE_BUDGET // (per_row * sublane)) // _LANE * _LANE)
    tile_b = _INPUT_PIPELINE_BUDGET // (per_row * tile_t)
    tile_b = max(sublane, (tile_b // sublane) * sublane)
    # Keep >= _TARGET_BATCH_TILES blocks on the parallel batch axis (v7x 2 TCs,
    # megacore) as long as each input block stays >= _MIN_BLOCK_BYTES.
    rows_target = _round_up(_cdiv(B, _TARGET_BATCH_TILES), sublane)
    rows_min_blk = _round_up(_cdiv(_MIN_BLOCK_BYTES, itemsize * tile_t), sublane)
    tile_b = min(tile_b, max(rows_target, rows_min_blk),
                 _MAX_TILE_B, _round_up(B, sublane))
    tile_b = max(tile_b, sublane)
    return tile_b, tile_t


def neg_pearson(x, y, *, block_b=None, block_t=None):
    if x.shape != y.shape:
        raise ValueError("`x` and `y` MUST have same size!!!")
    if x.ndim != 2:
        raise ValueError("`len(x.shape)` MUST equal 2!!!")
    B, T = x.shape
    itemsize = jnp.dtype(x.dtype).itemsize
    sublane = max(_SUBLANE, 32 // itemsize)

    auto_b, auto_t = _choose_tiles(B, T, itemsize)
    tile_b = auto_b if block_b is None else block_b
    tile_t = auto_t if block_t is None else block_t
    if tile_t % _LANE != 0:
        raise ValueError("block_t must be a multiple of 128")
    if tile_b % sublane != 0:
        raise ValueError(f"block_b must be a multiple of {sublane}")

    grid_b = _cdiv(B, tile_b)
    grid_t = _cdiv(T, tile_t)

    kernel = functools.partial(_neg_pearson_kernel,
                               tile_t=tile_t, grid_t=grid_t, total_t=T)

    # Output rows are padded up to the tile grid (no out-of-bounds output
    # blocks); the ragged-batch garbage rows are sliced off below.
    cos = pl.pallas_call(
        kernel,
        out_shape=jax.ShapeDtypeStruct((grid_b * tile_b, 1), jnp.float32),
        grid_spec=pltpu.PrefetchScalarGridSpec(
            num_scalar_prefetch=0,
            grid=(grid_b, grid_t),
            in_specs=[
                pl.BlockSpec((tile_b, tile_t), lambda i, j: (i, j)),
                pl.BlockSpec((tile_b, tile_t), lambda i, j: (i, j)),
            ],
            out_specs=pl.BlockSpec((tile_b, 1), lambda i, j: (i, 0)),
            scratch_shapes=[pltpu.VMEM((tile_b, _LANE), jnp.float32)
                            for _ in range(3)],
        ),
        compiler_params=pltpu.CompilerParams(
            dimension_semantics=("parallel", "arbitrary"),
            vmem_limit_bytes=_VMEM_LIMIT_BYTES,
        ),
    )(x, y)

    # Tiny finalize in plain JAX over the *real* batch rows only.
    return jnp.float32(1.0) - jnp.sum(cos[:B, 0]) / jnp.float32(B)


def _neg_pearson_ref(x, y):
    eps = jnp.float32(1e-8)
    x = x.astype(jnp.float32)
    y = y.astype(jnp.float32)
    xy = jnp.sum(x * y, axis=1)
    xn = jnp.maximum(jnp.sqrt(jnp.sum(x * x, axis=1)), eps)
    yn = jnp.maximum(jnp.sqrt(jnp.sum(y * y, axis=1)), eps)
    return 1.0 - jnp.mean(xy / (xn * yn))


if __name__ == "__main__":
    key = jax.random.PRNGKey(0)
    k1, k2, k3, k4, k5, k6, k7, k8 = jax.random.split(key, 8)

    # 1) Small aligned case matching the 2-D [batch, signal_length] module input.
    x = jax.random.normal(k1, (16, 128), dtype=jnp.float32)
    y = jax.random.normal(k2, (16, 128), dtype=jnp.float32)
    out = jax.block_until_ready(neg_pearson(x, y))
    ref = _neg_pearson_ref(x, y)
    assert jnp.allclose(out, ref, atol=1e-5, rtol=1e-5), (out, ref)

    # 2) Ragged B and T: exercises clipped edge blocks + in-kernel column mask
    #    (no jnp.pad HBM copy on this path anymore).
    x2 = jax.random.normal(k3, (10, 300), dtype=jnp.float32)
    y2 = jax.random.normal(k4, (10, 300), dtype=jnp.float32)
    out2 = jax.block_until_ready(neg_pearson(x2, y2))
    ref2 = _neg_pearson_ref(x2, y2)
    assert jnp.allclose(out2, ref2, atol=1e-5, rtol=1e-5), (out2, ref2)

    # 3) Multi-tile grid on both axes (forced small blocks): exercises the
    #    cross-step accumulators, the masked-last-T-tile branch and ragged batch.
    x3 = jax.random.normal(k5, (20, 520), dtype=jnp.float32)
    y3 = jax.random.normal(k6, (20, 520), dtype=jnp.float32)
    out3 = jax.block_until_ready(neg_pearson(x3, y3, block_b=8, block_t=256))
    ref3 = _neg_pearson_ref(x3, y3)
    assert jnp.allclose(out3, ref3, atol=1e-5, rtol=1e-5), (out3, ref3)

    # 4) bf16 inputs: exercises the 16-row packed sublane tile + per-chunk upcast.
    x4 = jax.random.normal(k7, (24, 200), dtype=jnp.float32).astype(jnp.bfloat16)
    y4 = jax.random.normal(k8, (24, 200), dtype=jnp.float32).astype(jnp.bfloat16)
    out4 = jax.block_until_ready(neg_pearson(x4, y4))
    ref4 = _neg_pearson_ref(x4, y4)
    assert jnp.allclose(out4, ref4, atol=1e-4, rtol=1e-4), (out4, ref4)

    print("KERNEL_OK")
</pallas_src>

<mosaic_0001>
module attributes {stable_mosaic.version = 11 : i64} {
  func.func @_neg_pearson_kernel(%arg0: i32, %arg1: i32, %arg2: memref<16x128xf32, #tpu.memory_space<vmem>>, %arg3: memref<16x128xf32, #tpu.memory_space<vmem>>, %arg4: memref<16x1xf32, #tpu.memory_space<vmem>>, %arg5: memref<16x128xf32, #tpu.memory_space<vmem>>, %arg6: memref<16x128xf32, #tpu.memory_space<vmem>>, %arg7: memref<16x128xf32, #tpu.memory_space<vmem>>) attributes {dimension_semantics = [#tpu.dimension_semantics<parallel>, #tpu.dimension_semantics<arbitrary>], iteration_bounds = array<i64: 1, 1>, scalar_prefetch = 0 : i64, scratch_operands = 3 : i64, tpu.core_type = #tpu.core_type<tc>, window_params = [{transform_indices = @transform_0, window_bounds = array<i64: 16, 128>}, {transform_indices = @transform_1, window_bounds = array<i64: 16, 128>}, {transform_indices = @transform_2, window_bounds = array<i64: 16, 1>}]} {
    %c0_i32 = arith.constant 0 : i32
    %0 = arith.cmpi eq, %arg1, %c0_i32 : i32
    %1 = arith.extui %0 : i1 to i32
    %c0_i32_0 = arith.constant 0 : i32
    %2 = arith.cmpi ne, %1, %c0_i32_0 : i32
    scf.if %2 {
      %cst = arith.constant 0.000000e+00 : f32
      %20 = vector.broadcast %cst : f32 to vector<16x128xf32>
      %c0_18 = arith.constant 0 : index
      %c0_19 = arith.constant 0 : index
      %21 = vector.load %arg5[%c0_18, %c0_19] : memref<16x128xf32, #tpu.memory_space<vmem>>, vector<16x128xf32>
      tpu.vector_store %arg5[%c0_18, %c0_19], %20 {strides = array<i32>} : memref<16x128xf32, #tpu.memory_space<vmem>>, vector<16x128xf32>,
      %cst_20 = arith.constant 0.000000e+00 : f32
      %22 = vector.broadcast %cst_20 : f32 to vector<16x128xf32>
      %c0_21 = arith.constant 0 : index
      %c0_22 = arith.constant 0 : index
      %23 = vector.load %arg6[%c0_21, %c0_22] : memref<16x128xf32, #tpu.memory_space<vmem>>, vector<16x128xf32>
      tpu.vector_store %arg6[%c0_21, %c0_22], %22 {strides = array<i32>} : memref<16x128xf32, #tpu.memory_space<vmem>>, vector<16x128xf32>,
      %cst_23 = arith.constant 0.000000e+00 : f32
      %24 = vector.broadcast %cst_23 : f32 to vector<16x128xf32>
      %c0_24 = arith.constant 0 : index
      %c0_25 = arith.constant 0 : index
      %25 = vector.load %arg7[%c0_24, %c0_25] : memref<16x128xf32, #tpu.memory_space<vmem>>, vector<16x128xf32>
      tpu.vector_store %arg7[%c0_24, %c0_25], %24 {strides = array<i32>} : memref<16x128xf32, #tpu.memory_space<vmem>>, vector<16x128xf32>,
    } else {
    }
    %c0 = arith.constant 0 : index
    %c0_1 = arith.constant 0 : index
    %3 = vector.load %arg2[%c0, %c0_1] : memref<16x128xf32, #tpu.memory_space<vmem>>, vector<16x128xf32>
    %c0_2 = arith.constant 0 : index
    %c0_3 = arith.constant 0 : index
    %4 = vector.load %arg3[%c0_2, %c0_3] : memref<16x128xf32, #tpu.memory_space<vmem>>, vector<16x128xf32>
    %c0_4 = arith.constant 0 : index
    %c0_5 = arith.constant 0 : index
    %5 = vector.load %arg5[%c0_4, %c0_5] : memref<16x128xf32, #tpu.memory_space<vmem>>, vector<16x128xf32>
    %6 = arith.mulf %3, %4 : vector<16x128xf32>
    %7 = arith.addf %5, %6 : vector<16x128xf32>
    %c0_6 = arith.constant 0 : index
    %c0_7 = arith.constant 0 : index
    %8 = vector.load %arg5[%c0_6, %c0_7] : memref<16x128xf32, #tpu.memory_space<vmem>>, vector<16x128xf32>
    tpu.vector_store %arg5[%c0_6, %c0_7], %7 {strides = array<i32>} : memref<16x128xf32, #tpu.memory_space<vmem>>, vector<16x128xf32>,
    %c0_8 = arith.constant 0 : index
    %c0_9 = arith.constant 0 : index
    %9 = vector.load %arg6[%c0_8, %c0_9] : memref<16x128xf32, #tpu.memory_space<vmem>>, vector<16x128xf32>
    %10 = arith.mulf %3, %3 : vector<16x128xf32>
    %11 = arith.addf %9, %10 : vector<16x128xf32>
    %c0_10 = arith.constant 0 : index
    %c0_11 = arith.constant 0 : index
    %12 = vector.load %arg6[%c0_10, %c0_11] : memref<16x128xf32, #tpu.memory_space<vmem>>, vector<16x128xf32>
    tpu.vector_store %arg6[%c0_10, %c0_11], %11 {strides = array<i32>} : memref<16x128xf32, #tpu.memory_space<vmem>>, vector<16x128xf32>,
    %c0_12 = arith.constant 0 : index
    %c0_13 = arith.constant 0 : index
    %13 = vector.load %arg7[%c0_12, %c0_13] : memref<16x128xf32, #tpu.memory_space<vmem>>, vector<16x128xf32>
    %14 = arith.mulf %4, %4 : vector<16x128xf32>
    %15 = arith.addf %13, %14 : vector<16x128xf32>
    %c0_14 = arith.constant 0 : index
    %c0_15 = arith.constant 0 : index
    %16 = vector.load %arg7[%c0_14, %c0_15] : memref<16x128xf32, #tpu.memory_space<vmem>>, vector<16x128xf32>
    tpu.vector_store %arg7[%c0_14, %c0_15], %15 {strides = array<i32>} : memref<16x128xf32, #tpu.memory_space<vmem>>, vector<16x128xf32>,
    %c0_i32_16 = arith.constant 0 : i32
    %17 = arith.cmpi eq, %arg1, %c0_i32_16 : i32
    %18 = arith.extui %17 : i1 to i32
    %c0_i32_17 = arith.constant 0 : i32
    %19 = arith.cmpi ne, %18, %c0_i32_17 : i32
    scf.if %19 {
      %c0_18 = arith.constant 0 : index
      %c0_19 = arith.constant 0 : index
      %20 = vector.load %arg5[%c0_18, %c0_19] : memref<16x128xf32, #tpu.memory_space<vmem>>, vector<16x128xf32>
      %cst = arith.constant dense<0.000000e+00> : vector<16xf32>
      %21 = vector.multi_reduction <add>, %20, %cst [1] : vector<16x128xf32> to vector<16xf32>
      %22 = vector.shape_cast %21 : vector<16xf32> to vector<16x1xf32>
      %c0_20 = arith.constant 0 : index
      %c0_21 = arith.constant 0 : index
      %23 = vector.load %arg6[%c0_20, %c0_21] : memref<16x128xf32, #tpu.memory_space<vmem>>, vector<16x128xf32>
      %cst_22 = arith.constant dense<0.000000e+00> : vector<16xf32>
      %24 = vector.multi_reduction <add>, %23, %cst_22 [1] : vector<16x128xf32> to vector<16xf32>
      %25 = vector.shape_cast %24 : vector<16xf32> to vector<16x1xf32>
      %c0_23 = arith.constant 0 : index
      %c0_24 = arith.constant 0 : index
      %26 = vector.load %arg7[%c0_23, %c0_24] : memref<16x128xf32, #tpu.memory_space<vmem>>, vector<16x128xf32>
      %cst_25 = arith.constant dense<0.000000e+00> : vector<16xf32>
      %27 = vector.multi_reduction <add>, %26, %cst_25 [1] : vector<16x128xf32> to vector<16xf32>
      %28 = vector.shape_cast %27 : vector<16xf32> to vector<16x1xf32>
      %cst_26 = arith.constant 1.000000e-16 : f32
      %29 = vector.broadcast %cst_26 : f32 to vector<16x1xf32>
      %30 = arith.maximumf %25, %29 : vector<16x1xf32>
      %31 = math.rsqrt %30 : vector<16x1xf32>
      %32 = arith.mulf %22, %31 : vector<16x1xf32>
      %cst_27 = arith.constant 1.000000e-16 : f32
      %33 = vector.broadcast %cst_27 : f32 to vector<16x1xf32>
      %34 = arith.maximumf %28, %33 : vector<16x1xf32>
      %35 = math.rsqrt %34 : vector<16x1xf32>
      %36 = arith.mulf %32, %35 : vector<16x1xf32>
      %c0_28 = arith.constant 0 : index
      %c0_29 = arith.constant 0 : index
      %37 = vector.load %arg4[%c0_28, %c0_29] : memref<16x1xf32, #tpu.memory_space<vmem>>, vector<16x1xf32>
      tpu.vector_store %arg4[%c0_28, %c0_29], %36 {strides = array<i32>} : memref<16x1xf32, #tpu.memory_space<vmem>>, vector<16x1xf32>,
    } else {
    }
    return
  }
  func.func @transform_0(%arg0: i32, %arg1: i32) -> (i32, i32) {
    %c0_i32 = arith.constant 0 : i32
    return %arg0, %arg1 : i32, i32
  }
  func.func @transform_1(%arg0: i32, %arg1: i32) -> (i32, i32) {
    %c0_i32 = arith.constant 0 : i32
    return %arg0, %arg1 : i32, i32
  }
  func.func @transform_2(%arg0: i32, %arg1: i32) -> (i32, i32) {
    %c0_i32 = arith.constant 0 : i32
    %c0_i32_0 = arith.constant 0 : i32
    return %arg0, %c0_i32 : i32, i32
  }
}

</mosaic_0001>

<bundles_post_ra>
// kernel: tpu_custom_call.1
= control target key start
LH: loop header
LB: loop body
LE: loop exit
PB: predicated region body
PF: predicated region fallthrough
CT: control target
= control target key end

     0   :  { %7 = vsyncpa [#allocation6], 0  ;;  %s206_s0 = inlined_call_operand.hbm [shape: f32[16,128], index: 0, kind: input, shape index: {}]   ;;  %s207_s1 = inlined_call_operand.hbm [shape: f32[16,128], index: 1, kind: input, shape index: {}]   ;;  %s208_s2 = inlined_call_operand.vmem [shape: f32[16,1], index: 2, kind: output, shape index: {}]  }
   0x1   :  { %8 = vsyncpa [#allocation8], 0  ;;  %s175_s9 = smov [#allocation5]  }
   0x2   :  { %s14_s10 = sshll.u32 %s175_s9, 4  ;;  %s15_s10 = int_to_ptr.vmem [resolvable:$true] %s14_s10 }
   0x3   :  { %s139_s11 = scalar_lea.vmem %s15_s10, 256  ;;  %p144_p1 = scmp.lt.s32.totalorder %s15_s10, %s15_s10 }
   0x4   :  { %p140_p0 = scmp.ne.s32.totalorder %s15_s10, %s139_s11  ;;  %p145_p2 = scmp.lt.s32.totalorder %s139_s11, %s139_s11 }
   0x6   :  { %p146_p3 = por %p145_p2, %p144_p1 }
   0x8   :  { %p147_p4 = pnand %p146_p3, %p140_p0 }
   0xa   :  { %150 = shalt.err (!%p147_p4)
}
   0xb   :  { %s176_s12 = smov 128   ;;  %s177_s13 = smov 8  }
   0xc   :  { %20 = dma.hbm_to_vmem [thread:$0]  %s206_s0, 256, %s15_s10, [#allocation6], %s176_s12, %s176_s12, %s177_s13  }
   0xd   :  { %s178_s16 = smov [#allocation7]  }
   0xe   :  { %s26_s17 = sshll.u32 %s178_s16, 4  ;;  %s27_s17 = int_to_ptr.vmem [resolvable:$true] %s26_s17 }
   0xf   :  { %s159_s18 = scalar_lea.vmem %s27_s17, 256  ;;  %p164_p6 = scmp.lt.s32.totalorder %s27_s17, %s27_s17 }
  0x10   :  { %p160_p5 = scmp.ne.s32.totalorder %s27_s17, %s159_s18  ;;  %p165_p7 = scmp.lt.s32.totalorder %s159_s18, %s159_s18 }
  0x12   :  { %p166_p8 = por %p165_p7, %p164_p6 }
  0x14   :  { %p167_p9 = pnand %p166_p8, %p160_p5 }
  0x16   :  { %170 = shalt.err (!%p167_p9)
}
  0x17   :  { %32 = dma.hbm_to_vmem [thread:$0]  %s207_s1, 256, %s27_s17, [#allocation8], %s176_s12, %s176_s12, %s177_s13  }
  0x18   :  { %171 = dma.done.wait [#allocation6], 256  }
  0x19   :  { %172 = vsyncadd [#allocation6], 4294967040 }
  0x1a   :  { %173 = dma.done.wait [#allocation8], 256  }
  0x1b   :  { %174 = vsyncadd [#allocation8], 4294967040  ;;  %v49_v0 = vld [vmem:[#allocation5] sm:$0xff]  ;;  %v51_v1 = vld [vmem:[#allocation7] sm:$0xff]  ;;  %vm110_vm0 = vcmask 7168  }
  0x1c   :  { %v50_v2 = vld [vmem:[#allocation5 + $0x8] sm:$0xff]  ;;  %v63_v3 = vmul.f32 %v49_v0, %v49_v0  ;;  %v71_v4 = vmul.f32 %v51_v1, %v51_v1  ;;  %v52_v5 = vld [vmem:[#allocation7 + $0x8] sm:$0xff]  ;;  %v55_v8 = vmul.f32 %v51_v1, %v49_v0 }
  0x1d   :  { %v64_v6 = vmul.f32 %v50_v2, %v50_v2  ;;  %v72_v7 = vmul.f32 %v52_v5, %v52_v5  ;;  %v56_v9 = vmul.f32 %v52_v5, %v50_v2 }
  0x1e   :  { %88 = vadd.xlane.f32.xlu0 %v63_v3  ;;  %94 = vadd.xlane.f32.xlu1 %v71_v4 }
  0x22   :  { %90 = vadd.xlane.f32.xlu0 %v64_v6  ;;  %96 = vadd.xlane.f32.xlu1 %v72_v7 }
  0x26   :  { %82 = vadd.xlane.f32.xlu0 %v55_v8  ;;  %84 = vadd.xlane.f32.xlu1 %v56_v9 }
  0xa7   :  { %v89_v10 = vpop.xlane.xlu0 %88  ;;  %v95_v11 = vpop.xlane.xlu1 %94 }
  0xa8   :  { %v98_v12 = vmax.f32 %v89_v10, 1e-16  ;;  %v104_v13 = vmax.f32 %v95_v11, 1e-16 }
  0xaa   :  { %123 = vrsqrt.f32 %v98_v12 }
  0xab   :  { %125 = vrsqrt.f32 %v104_v13  ;;  %v91_v14 = vpop.xlane.xlu0 %90  ;;  %v97_v15 = vpop.xlane.xlu1 %96 }
  0xac   :  { %v99_v16 = vmax.f32 %v91_v14, 1e-16  ;;  %v105_v17 = vmax.f32 %v97_v15, 1e-16 }
  0xae   :  { %127 = vrsqrt.f32 %v99_v16 }
  0xaf   :  { %129 = vrsqrt.f32 %v105_v17  ;;  %v83_v18 = vpop.xlane.xlu0 %82  ;;  %v85_v22 = vpop.xlane.xlu1 %84 }
  0xb7   :  { %v124_v19 = vpop.eup %123 }
  0xb8   :  { %v126_v20 = vpop.eup %125  ;;  %v102_v21 = vmul.f32 %v124_v19, %v83_v18 }
  0xba   :  { %v108_v23 = vmul.f32 %v126_v20, %v102_v21 }
  0xbb   :  { %v128_v24 = vpop.eup %127 }
  0xbc   :  { %v130_v25 = vpop.eup %129  ;;  %111 = vst.msk [vmem:[%s208_s2] sm:$0xff] %vm110_vm0, %v108_v23  ;;  %v103_v26 = vmul.f32 %v128_v24, %v85_v22 }
  0xbe   :  { %v109_v27 = vmul.f32 %v130_v25, %v103_v26 }
  0xc0   :  { %112 = vst.msk [vmem:[%s208_s2 + $0x8] sm:$0xff] %vm110_vm0, %v109_v27 }
  0xc1   :  { %117 = vsyncpa [#allocation6], 1 }
  0xc2   :  { %118 = vsyncpa [#allocation8], 1 }

</bundles_post_ra>
